<compile_context>
chip_gen: v7x
topology: tpu7x:2x2x1
jax: 0.10.0
libtpu: 0.0.40
codegen_flags: <defaults>
</compile_context>

<pallas_src>
import functools

import jax
import jax.numpy as jnp
from jax import lax
from jax.experimental import pallas as pl
from jax.experimental.pallas import tpu as pltpu


def _msa_kernel(x_ref, bias_ref, wqkv_ref, wmt_ref, bm_ref, o_ref, ctx_ref, *,
                head_num, one_head_dim):
    # Grid: (batch, head); head is the innermost ("arbitrary") axis.
    # x_ref:    (1, N, F)     bf16  (resident across the heads of a batch)
    # bias_ref: (1, 1, N, N)  bf16  (per-(batch, head) tile)
    # wqkv_ref: (1, F, 3*Dh)  bf16  (per-head fused [q(scaled) | k | v] weights)
    # wmt_ref:  (H*Dh, F)     bf16  (merge_head weight, transposed)
    # bm_ref:   (1, F)        f32   (merge_head bias)
    # o_ref:    (1, N, F)           (same block across heads; written at last head)
    # ctx_ref:  (H, N, Dh)    bf16 VMEM scratch (per-head context)
    H = head_num
    Dh = one_head_dim
    h = pl.program_id(1)

    x = x_ref[0]                                                     # (N, F) bf16

    # Per-head fused QKV projection: one MXU matmul with full K = F contraction.
    qkv = jnp.dot(x, wqkv_ref[0],
                  preferred_element_type=jnp.float32).astype(jnp.bfloat16)  # (N, 3*Dh)
    q = qkv[:, 0 * Dh:1 * Dh]                                        # static lane slices
    k = qkv[:, 1 * Dh:2 * Dh]
    v = qkv[:, 2 * Dh:3 * Dh]

    # Attention scores (contract last dims -> trans_b MXU matmul) + additive bias.
    s = lax.dot_general(q, k, (((1,), (1,)), ((), ())),
                        preferred_element_type=jnp.float32)          # (N, N) f32
    s = s + bias_ref[0, 0].astype(jnp.float32)

    # Numerically-stable softmax for this head.
    s = s - jnp.max(s, axis=-1, keepdims=True)
    p = jnp.exp(s)
    denom = jnp.sum(p, axis=-1, keepdims=True)                       # (N, 1)

    ctx = jnp.dot(p.astype(jnp.bfloat16), v,
                  preferred_element_type=jnp.float32)                # (N, Dh) f32
    ctx = ctx * pl.reciprocal(denom, approx=True)                    # EUP reciprocal

    ctx_ref[h] = ctx.astype(jnp.bfloat16)                            # dynamic leading-dim store

    # Last head of this batch: assemble (N, H*Dh) context (static reads + lane
    # concat) and apply merge_head as a single full-K (K = H*Dh) MXU matmul.
    @pl.when(h == H - 1)
    def _():
        ctx_full = jnp.concatenate([ctx_ref[i] for i in range(H)], axis=-1)  # (N, H*Dh) bf16
        out = jnp.dot(ctx_full, wmt_ref[...],
                      preferred_element_type=jnp.float32) + bm_ref[...]      # (N, F)
        o_ref[0] = out.astype(o_ref.dtype)


def msa_block(x, bias, wq, wk, wv, wm, bm, *, head_num):
    B, N, F = x.shape
    hd = wq.shape[0]                     # H * Dh
    H = head_num
    Dh = hd // H
    scale = float(Dh) ** (-0.5)
    out_dtype = x.dtype

    # --- parameter / layout prep (trace-time; cheap vs the kernel's bias traffic) ---
    # Per-head fused [q(scaled) | k | v] projection weights, laid out (H, F, 3*Dh)
    # so each grid step DMAs only its own head's columns (12 KiB at F=128).
    wq_h = (wq * scale).reshape(H, Dh, F)
    wk_h = wk.reshape(H, Dh, F)
    wv_h = wv.reshape(H, Dh, F)
    wqkv = jnp.concatenate([wq_h, wk_h, wv_h], axis=1)               # (H, 3*Dh, F)
    wqkv = jnp.transpose(wqkv, (0, 2, 1)).astype(jnp.bfloat16)       # (H, F, 3*Dh)

    wmt = wm.T.astype(jnp.bfloat16)                                  # (H*Dh, F)
    bm2d = bm.reshape(1, F).astype(jnp.float32)

    # bias.permute(0, 3, 1, 2) done once here; cast to bf16 so the dominant HBM
    # stream (B*H*N^2) is halved.
    bias_p = jnp.transpose(bias, (0, 3, 1, 2)).astype(jnp.bfloat16)  # (B, H, N, N)

    x_bf = x.astype(jnp.bfloat16)

    kernel = functools.partial(_msa_kernel, head_num=H, one_head_dim=Dh)

    # VMEM budget derived from the actual block shapes (double-buffered inputs,
    # lane-padded ctx scratch, live score/prob tensors) with 2x headroom,
    # capped below v7x's 64 MiB physical VMEM.
    out_isz = jnp.dtype(out_dtype).itemsize
    est = (2 * (N * N * 2)                       # bias block (bf16), double buffered
           + 2 * (N * F * 2)                     # x block (bf16)
           + 2 * (N * F * out_isz)               # out block
           + 2 * (F * 3 * Dh * 2 + hd * F * 2 + F * 4)   # weights / bias
           + H * N * 128 * 2                     # ctx scratch (lane-padded bf16)
           + 3 * N * N * 4 + 2 * N * F * 4)      # live scores/probs headroom
    vmem_limit = int(min(64 * 1024 * 1024, max(32 * 1024 * 1024, 2 * est)))

    flops = (2 * B * N * F * (3 * hd)            # qkv projection
             + 4 * B * H * N * N * Dh            # scores + p@v
             + 2 * B * N * hd * F)               # merge_head
    bytes_accessed = (B * H * N * N * 2          # bias (bf16)
                      + B * N * F * 2            # x (bf16)
                      + B * N * F * out_isz      # out
                      + (3 * hd * F + hd * F + F) * 4)
    cost = pl.CostEstimate(flops=int(flops),
                           transcendentals=int(B * H * N * N),
                           bytes_accessed=int(bytes_accessed))

    return pl.pallas_call(
        kernel,
        out_shape=jax.ShapeDtypeStruct((B, N, F), out_dtype),
        grid_spec=pltpu.PrefetchScalarGridSpec(
            num_scalar_prefetch=0,
            grid=(B, H),   # B*H steps: pipelined bias DMA, dual-core work on v7x
            in_specs=[
                pl.BlockSpec((1, N, F), lambda b, h: (b, 0, 0)),         # x (resident per b)
                pl.BlockSpec((1, 1, N, N), lambda b, h: (b, h, 0, 0)),   # bias tile (bf16)
                pl.BlockSpec((1, F, 3 * Dh), lambda b, h: (h, 0, 0)),    # per-head QKV weight
                pl.BlockSpec((hd, F), lambda b, h: (0, 0)),              # merge weight (wm.T)
                pl.BlockSpec((1, F), lambda b, h: (0, 0)),               # merge bias
            ],
            out_specs=pl.BlockSpec((1, N, F), lambda b, h: (b, 0, 0)),
            scratch_shapes=[pltpu.VMEM((H, N, Dh), jnp.bfloat16)],
        ),
        compiler_params=pltpu.CompilerParams(
            dimension_semantics=("parallel", "arbitrary"),
            vmem_limit_bytes=vmem_limit),
        cost_estimate=cost,
    )(x_bf, bias_p, wqkv, wmt, bm2d)


def msa_block_reference(x, bias, wq, wk, wv, wm, bm, *, head_num):
    """Plain-JAX f32 reference mirroring the PyTorch forward (eval mode)."""
    B, N, F = x.shape
    Dh = wq.shape[0] // head_num
    scale = float(Dh) ** (-0.5)

    def proj(w):
        y = x @ w.T                                                  # (B, N, H*Dh)
        return y.reshape(B, N, head_num, Dh).transpose(0, 2, 1, 3)   # (B, H, N, Dh)

    q = proj(wq) * scale
    k = proj(wk)
    v = proj(wv)
    attn = q @ jnp.swapaxes(k, -2, -1)                               # (B, H, N, N)
    attn = attn + jnp.transpose(bias, (0, 3, 1, 2))                  # bias.permute(0,3,1,2)
    attn = jax.nn.softmax(attn, axis=-1)
    ctx = attn @ v                                                   # (B, H, N, Dh)
    ctx = ctx.transpose(0, 2, 1, 3).reshape(B, N, head_num * Dh)
    return ctx @ wm.T + bm


if __name__ == "__main__":
    # Small shapes consistent with the module: feature_dim=128, head_num=8 (Dh=16).
    B, N, F, H = 2, 8, 128, 8
    Dh = F // H

    key = jax.random.PRNGKey(0)
    kx, kb, k1, k2, k3, k4, k5 = jax.random.split(key, 7)

    x = jax.random.normal(kx, (B, N, F), dtype=jnp.float32)
    bias = 0.1 * jax.random.normal(kb, (B, N, N, H), dtype=jnp.float32)

    # Deterministic synthetic parameters (nn.Linear weight shape = (out, in)).
    wq = 0.05 * jax.random.normal(k1, (H * Dh, F), dtype=jnp.float32)
    wk = 0.05 * jax.random.normal(k2, (H * Dh, F), dtype=jnp.float32)
    wv = 0.05 * jax.random.normal(k3, (H * Dh, F), dtype=jnp.float32)
    wm = 0.05 * jax.random.normal(k4, (F, H * Dh), dtype=jnp.float32)
    bm = 0.05 * jax.random.normal(k5, (F,), dtype=jnp.float32)

    out = msa_block(x, bias, wq, wk, wv, wm, bm, head_num=H)
    out = jax.block_until_ready(out)

    ref = msa_block_reference(x, bias, wq, wk, wv, wm, bm, head_num=H)
    assert out.shape == (B, N, F)
    # Tolerance reflects bf16 matmul operands (f32 accumulation) and the EUP
    # approximate reciprocal on the softmax denominator, vs an all-f32 reference.
    assert jnp.allclose(out, ref, atol=2e-2, rtol=2e-2), "mismatch vs reference"

    print("KERNEL_OK")
</pallas_src>

<mosaic_0001>
module attributes {stable_mosaic.version = 11 : i64} {
  func.func @_msa_kernel(%arg0: i32, %arg1: i32, %arg2: memref<1x8x128xbf16, #tpu.memory_space<vmem>>, %arg3: memref<1x1x8x8xbf16, #tpu.memory_space<vmem>>, %arg4: memref<1x128x48xbf16, #tpu.memory_space<vmem>>, %arg5: memref<128x128xbf16, #tpu.memory_space<vmem>>, %arg6: memref<1x128xf32, #tpu.memory_space<vmem>>, %arg7: memref<1x8x128xf32, #tpu.memory_space<vmem>>, %arg8: memref<8x8x16xbf16, #tpu.memory_space<vmem>>) attributes {dimension_semantics = [#tpu.dimension_semantics<parallel>, #tpu.dimension_semantics<arbitrary>], iteration_bounds = array<i64: 2, 8>, scalar_prefetch = 0 : i64, scratch_operands = 1 : i64, tpu.core_type = #tpu.core_type<tc>, window_params = [{transform_indices = @transform_0, window_bounds = array<i64: 1, 8, 128>}, {transform_indices = @transform_1, window_bounds = array<i64: 1, 1, 8, 8>}, {transform_indices = @transform_2, window_bounds = array<i64: 1, 128, 48>}, {pipeline_mode = #tpu.pipeline_mode<synchronous>, transform_indices = @transform_3, window_bounds = array<i64: 128, 128>}, {pipeline_mode = #tpu.pipeline_mode<synchronous>, transform_indices = @transform_4, window_bounds = array<i64: 1, 128>}, {transform_indices = @transform_5, window_bounds = array<i64: 1, 8, 128>}]} {
    %c0 = arith.constant 0 : index
    %c0_0 = arith.constant 0 : index
    %c0_1 = arith.constant 0 : index
    %0 = vector.load %arg2[%c0, %c0_0, %c0_1] : memref<1x8x128xbf16, #tpu.memory_space<vmem>>, vector<1x8x128xbf16>
    %1 = vector.shape_cast %0 : vector<1x8x128xbf16> to vector<8x128xbf16>
    %c0_2 = arith.constant 0 : index
    %c0_3 = arith.constant 0 : index
    %c0_4 = arith.constant 0 : index
    %2 = vector.load %arg4[%c0_2, %c0_3, %c0_4] : memref<1x128x48xbf16, #tpu.memory_space<vmem>>, vector<1x128x48xbf16>
    %3 = vector.shape_cast %2 : vector<1x128x48xbf16> to vector<128x48xbf16>
    %cst = arith.constant dense<0.000000e+00> : vector<8x48xf32>
    %4 = tpu.matmul %1, %3, %cst {dimension_numbers = #tpu.dot_dimension_numbers<[1], [0], [0], [1], [0, 0, 1, 1], [], []>} : vector<8x128xbf16>, vector<128x48xbf16>, vector<8x48xf32> -> vector<8x48xf32>
    %5 = arith.truncf %4 : vector<8x48xf32> to vector<8x48xbf16>
    %6 = vector.extract_strided_slice %5 {offsets = [0, 0], sizes = [8, 16], strides = [1, 1]} : vector<8x48xbf16> to vector<8x16xbf16>
    %7 = vector.extract_strided_slice %5 {offsets = [0, 16], sizes = [8, 16], strides = [1, 1]} : vector<8x48xbf16> to vector<8x16xbf16>
    %8 = vector.extract_strided_slice %5 {offsets = [0, 32], sizes = [8, 16], strides = [1, 1]} : vector<8x48xbf16> to vector<8x16xbf16>
    %cst_5 = arith.constant dense<0.000000e+00> : vector<8x8xf32>
    %9 = tpu.matmul %6, %7, %cst_5 {dimension_numbers = #tpu.dot_dimension_numbers<[1], [1], [0], [0], [0, 0, 1, 0], [], []>} : vector<8x16xbf16>, vector<8x16xbf16>, vector<8x8xf32> -> vector<8x8xf32>
    %c0_6 = arith.constant 0 : index
    %c0_7 = arith.constant 0 : index
    %c0_8 = arith.constant 0 : index
    %c0_9 = arith.constant 0 : index
    %10 = vector.load %arg3[%c0_6, %c0_7, %c0_8, %c0_9] : memref<1x1x8x8xbf16, #tpu.memory_space<vmem>>, vector<1x1x8x8xbf16>
    %11 = vector.shape_cast %10 : vector<1x1x8x8xbf16> to vector<8x8xbf16>
    %12 = arith.extf %11 : vector<8x8xbf16> to vector<8x8xf32>
    %13 = arith.addf %9, %12 : vector<8x8xf32>
    %cst_10 = arith.constant dense<0xFF800000> : vector<8xf32>
    %14 = vector.multi_reduction <maximumf>, %13, %cst_10 [1] : vector<8x8xf32> to vector<8xf32>
    %15 = vector.shape_cast %14 : vector<8xf32> to vector<8x1xf32>
    %16 = vector.broadcast %15 : vector<8x1xf32> to vector<8x8xf32>
    %17 = arith.subf %13, %16 : vector<8x8xf32>
    %18 = math.exp %17 : vector<8x8xf32>
    %cst_11 = arith.constant dense<0.000000e+00> : vector<8xf32>
    %19 = vector.multi_reduction <add>, %18, %cst_11 [1] : vector<8x8xf32> to vector<8xf32>
    %20 = vector.shape_cast %19 : vector<8xf32> to vector<8x1xf32>
    %21 = arith.truncf %18 : vector<8x8xf32> to vector<8x8xbf16>
    %cst_12 = arith.constant dense<0.000000e+00> : vector<8x16xf32>
    %22 = tpu.matmul %21, %8, %cst_12 {dimension_numbers = #tpu.dot_dimension_numbers<[1], [0], [0], [1], [0, 0, 1, 1], [], []>} : vector<8x8xbf16>, vector<8x16xbf16>, vector<8x16xf32> -> vector<8x16xf32>
    %23 = tpu.reciprocal %20 {approx = true} : vector<8x1xf32> -> vector<8x1xf32>
    %24 = vector.broadcast %23 : vector<8x1xf32> to vector<8x16xf32>
    %25 = arith.mulf %22, %24 : vector<8x16xf32>
    %26 = arith.truncf %25 : vector<8x16xf32> to vector<8x16xbf16>
    %27 = arith.index_cast %arg1 : i32 to index
    %c0_13 = arith.constant 0 : index
    %c0_14 = arith.constant 0 : index
    %28 = vector.load %arg8[%27, %c0_13, %c0_14] : memref<8x8x16xbf16, #tpu.memory_space<vmem>>, vector<1x8x16xbf16>
    %29 = vector.shape_cast %28 : vector<1x8x16xbf16> to vector<8x16xbf16>
    %30 = vector.shape_cast %26 : vector<8x16xbf16> to vector<1x8x16xbf16>
    tpu.vector_store %arg8[%27, %c0_13, %c0_14], %30 {strides = array<i32>} : memref<8x8x16xbf16, #tpu.memory_space<vmem>>, vector<1x8x16xbf16>,
    %c7_i32 = arith.constant 7 : i32
    %31 = arith.cmpi eq, %arg1, %c7_i32 : i32
    %32 = arith.extui %31 : i1 to i32
    %c0_i32 = arith.constant 0 : i32
    %33 = arith.cmpi ne, %32, %c0_i32 : i32
    scf.if %33 {
      %c0_15 = arith.constant 0 : index
      %c0_16 = arith.constant 0 : index
      %c0_17 = arith.constant 0 : index
      %34 = vector.load %arg8[%c0_15, %c0_16, %c0_17] : memref<8x8x16xbf16, #tpu.memory_space<vmem>>, vector<1x8x16xbf16>
      %35 = vector.shape_cast %34 : vector<1x8x16xbf16> to vector<8x16xbf16>
      %c1 = arith.constant 1 : index
      %c0_18 = arith.constant 0 : index
      %c0_19 = arith.constant 0 : index
      %36 = vector.load %arg8[%c1, %c0_18, %c0_19] : memref<8x8x16xbf16, #tpu.memory_space<vmem>>, vector<1x8x16xbf16>
      %37 = vector.shape_cast %36 : vector<1x8x16xbf16> to vector<8x16xbf16>
      %c2 = arith.constant 2 : index
      %c0_20 = arith.constant 0 : index
      %c0_21 = arith.constant 0 : index
      %38 = vector.load %arg8[%c2, %c0_20, %c0_21] : memref<8x8x16xbf16, #tpu.memory_space<vmem>>, vector<1x8x16xbf16>
      %39 = vector.shape_cast %38 : vector<1x8x16xbf16> to vector<8x16xbf16>
      %c3 = arith.constant 3 : index
      %c0_22 = arith.constant 0 : index
      %c0_23 = arith.constant 0 : index
      %40 = vector.load %arg8[%c3, %c0_22, %c0_23] : memref<8x8x16xbf16, #tpu.memory_space<vmem>>, vector<1x8x16xbf16>
      %41 = vector.shape_cast %40 : vector<1x8x16xbf16> to vector<8x16xbf16>
      %c4 = arith.constant 4 : index
      %c0_24 = arith.constant 0 : index
      %c0_25 = arith.constant 0 : index
      %42 = vector.load %arg8[%c4, %c0_24, %c0_25] : memref<8x8x16xbf16, #tpu.memory_space<vmem>>, vector<1x8x16xbf16>
      %43 = vector.shape_cast %42 : vector<1x8x16xbf16> to vector<8x16xbf16>
      %c5 = arith.constant 5 : index
      %c0_26 = arith.constant 0 : index
      %c0_27 = arith.constant 0 : index
      %44 = vector.load %arg8[%c5, %c0_26, %c0_27] : memref<8x8x16xbf16, #tpu.memory_space<vmem>>, vector<1x8x16xbf16>
      %45 = vector.shape_cast %44 : vector<1x8x16xbf16> to vector<8x16xbf16>
      %c6 = arith.constant 6 : index
      %c0_28 = arith.constant 0 : index
      %c0_29 = arith.constant 0 : index
      %46 = vector.load %arg8[%c6, %c0_28, %c0_29] : memref<8x8x16xbf16, #tpu.memory_space<vmem>>, vector<1x8x16xbf16>
      %47 = vector.shape_cast %46 : vector<1x8x16xbf16> to vector<8x16xbf16>
      %c7 = arith.constant 7 : index
      %c0_30 = arith.constant 0 : index
      %c0_31 = arith.constant 0 : index
      %48 = vector.load %arg8[%c7, %c0_30, %c0_31] : memref<8x8x16xbf16, #tpu.memory_space<vmem>>, vector<1x8x16xbf16>
      %49 = vector.shape_cast %48 : vector<1x8x16xbf16> to vector<8x16xbf16>
      %50 = tpu.concatenate %35, %37, %39, %41, %43, %45, %47, %49 in 1 : vector<8x16xbf16>, vector<8x16xbf16>, vector<8x16xbf16>, vector<8x16xbf16>, vector<8x16xbf16>, vector<8x16xbf16>, vector<8x16xbf16>, vector<8x16xbf16> -> vector<8x128xbf16>
      %c0_32 = arith.constant 0 : index
      %c0_33 = arith.constant 0 : index
      %51 = vector.load %arg5[%c0_32, %c0_33] : memref<128x128xbf16, #tpu.memory_space<vmem>>, vector<128x128xbf16>
      %cst_34 = arith.constant dense<0.000000e+00> : vector<8x128xf32>
      %52 = tpu.matmul %50, %51, %cst_34 {dimension_numbers = #tpu.dot_dimension_numbers<[1], [0], [0], [1], [0, 0, 1, 1], [], []>} : vector<8x128xbf16>, vector<128x128xbf16>, vector<8x128xf32> -> vector<8x128xf32>
      %c0_35 = arith.constant 0 : index
      %c0_36 = arith.constant 0 : index
      %53 = vector.load %arg6[%c0_35, %c0_36] : memref<1x128xf32, #tpu.memory_space<vmem>>, vector<1x128xf32>
      %54 = vector.broadcast %53 : vector<1x128xf32> to vector<8x128xf32>
      %55 = arith.addf %52, %54 : vector<8x128xf32>
      %c0_37 = arith.constant 0 : index
      %c0_38 = arith.constant 0 : index
      %c0_39 = arith.constant 0 : index
      %56 = vector.load %arg7[%c0_37, %c0_38, %c0_39] : memref<1x8x128xf32, #tpu.memory_space<vmem>>, vector<1x8x128xf32>
      %57 = vector.shape_cast %56 : vector<1x8x128xf32> to vector<8x128xf32>
      %58 = vector.shape_cast %55 : vector<8x128xf32> to vector<1x8x128xf32>
      tpu.vector_store %arg7[%c0_37, %c0_38, %c0_39], %58 {strides = array<i32>} : memref<1x8x128xf32, #tpu.memory_space<vmem>>, vector<1x8x128xf32>,
    } else {
    }
    return
  }
  func.func @transform_0(%arg0: i32, %arg1: i32) -> (i32, i32, i32) {
    %c0_i32 = arith.constant 0 : i32
    %c0_i32_0 = arith.constant 0 : i32
    %c0_i32_1 = arith.constant 0 : i32
    return %arg0, %c0_i32, %c0_i32_0 : i32, i32, i32
  }
  func.func @transform_1(%arg0: i32, %arg1: i32) -> (i32, i32, i32, i32) {
    %c0_i32 = arith.constant 0 : i32
    %c0_i32_0 = arith.constant 0 : i32
    %c0_i32_1 = arith.constant 0 : i32
    return %arg0, %arg1, %c0_i32, %c0_i32_0 : i32, i32, i32, i32
  }
  func.func @transform_2(%arg0: i32, %arg1: i32) -> (i32, i32, i32) {
    %c0_i32 = arith.constant 0 : i32
    %c0_i32_0 = arith.constant 0 : i32
    %c0_i32_1 = arith.constant 0 : i32
    return %arg1, %c0_i32, %c0_i32_0 : i32, i32, i32
  }
  func.func @transform_3(%arg0: i32, %arg1: i32) -> (i32, i32) {
    %c0_i32 = arith.constant 0 : i32
    %c0_i32_0 = arith.constant 0 : i32
    %c0_i32_1 = arith.constant 0 : i32
    return %c0_i32, %c0_i32_0 : i32, i32
  }
  func.func @transform_4(%arg0: i32, %arg1: i32) -> (i32, i32) {
    %c0_i32 = arith.constant 0 : i32
    %c0_i32_0 = arith.constant 0 : i32
    %c0_i32_1 = arith.constant 0 : i32
    return %c0_i32, %c0_i32_0 : i32, i32
  }
  func.func @transform_5(%arg0: i32, %arg1: i32) -> (i32, i32, i32) {
    %c0_i32 = arith.constant 0 : i32
    %c0_i32_0 = arith.constant 0 : i32
    %c0_i32_1 = arith.constant 0 : i32
    return %arg0, %c0_i32, %c0_i32_0 : i32, i32, i32
  }
}

</mosaic_0001>

<bundles_post_ra>
// kernel: tpu_custom_call.1
= control target key start
LH: loop header
LB: loop body
LE: loop exit
PB: predicated region body
PF: predicated region fallthrough
CT: control target
= control target key end

     0   :  { %10 = vsyncpa [#allocation4], 0  ;;  %s1370_s0 = inlined_call_operand.vmem [shape: bf16[2,8,128], index: 0, kind: input, shape index: {}]   ;;  %s1371_s1 = inlined_call_operand.vmem [shape: bf16[2,8,8,8], index: 1, kind: input, shape index: {}]   ;;  %s1372_s2 = inlined_call_operand.vmem [shape: bf16[8,128,48], index: 2, kind: input, shape index: {}]   ;;  %s1373_s3 = inlined_call_operand.vmem [shape: bf16[128,128], index: 3, kind: input, shape index: {}]   ;;  %s1374_s4 = inlined_call_operand.vmem [shape: f32[1,128], index: 4, kind: input, shape index: {}]   ;;  %s1375_s5 = inlined_call_operand.hbm [shape: f32[2,8,128], index: 5, kind: output, shape index: {}]  }
   0x1   :  { %12 = vsyncpa [#allocation4 + $0x1], 0  ;;  %s1182_s18 = smov 0   ;;  %s1184_s19 = smov 0  }
   0x2   :  { %s1186_s20 = smov 0   ;;  %s1188_s21 = smov 0  }
   0x3   :  { %s1190_s22 = smov 0   ;;  %s1192_s23 = smov 0  }
   0x4   :  { %s1194_s24 = smov 0   ;;  %s1196_s25 = smov 0  }
   0x5 LB: > { %s813_s26 = sadd.s32 4294967295, %s1136_s25   ;;  %s814_s27 = sadd.s32 4294967294, %s1136_s25   ;;  %s1136_s25 = sphi %s1196_s25, %s18_s25   ;;  %s1132_s24 = sphi %s1194_s24, %s1384_s24   ;;  %s1128_s23 = sphi %s1192_s23, %s1383_s23   ;;  %s1124_s22 = sphi %s1190_s22, %s1382_s22   ;;  %s1120_s21 = sphi %s1188_s21, %s1381_s21   ;;  %s1116_s20 = sphi %s1186_s20, %s1380_s20   ;;  %s1112_s19 = sphi %s1184_s19, %s1379_s19   ;;  %s1108_s18 = sphi %s1182_s18, %s1378_s18  }
   0x6   : > { %s27_s28 = sadd.s32 1, %s1128_s23  ;;  %s30_s29 = sadd.s32 1, %s1132_s24 }
   0x7   : > { %p28_p0 = scmp.ge.s32.totalorder %s27_s28, 8  ;;  %p169_p1 = scmp.ne.s32.totalorder %s1116_s20, %s1112_s19 }
   0x8   : > { %p170_p2 = scmp.eq.s32.totalorder %s813_s26, 15  ;;  %p175_p4 = scmp.ne.s32.totalorder %s1112_s19, %s1108_s18 }
   0x9   : > { %s1386_s28 = smov (%p28_p0, %s27_s28), 0  ;;  %s1388_s29 = smov (!%p28_p0, %s30_s29), %s1132_s24 }
   0xa   : > { %p1231_p3 = por %p170_p2, %p169_p1  ;;  %p32_p5 = scmp.ge.s32.totalorder %s1388_s29, 2 }
   0xb   : > { %p176_p6 = scmp.eq.s32.totalorder %s814_s27, 15  ;;  %p817_p7 = scmp.ge.s32.totalorder %s1136_s25, 1 }
   0xc   : > { %p226_p8 = scmp.lt.s32.totalorder %s1136_s25, 17  ;;  %s1390_s29 = smov (%p32_p5, %s1388_s29), 0 }
   0xd   : > { %p1241_p9 = por %p176_p6, %p175_p4  ;;  %s156_s7 = ssub.s32 %s1132_s24, %s1390_s29 }
   0xe   : > { %p227_p10 = pnand %p817_p7, %p226_p8  ;;  %s159_s8 = sadd.s32 1, %s1116_s20 }
   0xf   : > { %p157_p11 = scmp.eq.s32.totalorder %s156_s7, 0  ;;  %s263_s10 = sand.u32 (!%p227_p10), 1, %s1112_s19   ;;  %v1138_v0 = vmov (!%p227_p10), 0.0   ;;  %vm1139_vm0 = vmmov (!%p227_p10), 0   ;;  %vm395_vm1 = vcmask (!%p227_p10), 130048   ;;  %vm458_vm2 = vcmask (!%p227_p10), 1043456  }
  0x10   : > { %230 = sbr.rel (%p227_p10) target bundleno = 1361 (0x551), region = 40  ;;  %p272_p12 = scmp.lt.s32.totalorder (!%p227_p10), %s1120_s21, 7  ;;  %879 = vmatprep.subr.bf16.mxu0 (!%p227_p10), %v1138_v0  ;;  %895 = vmatprep.mubr.msk.bf16.mxu0 (!%p227_p10), %vm1139_vm0, %v1138_v0  ;;  %vm442_vm3 = vcmask (!%p227_p10), 64512   ;;  %vm507_vm4 = vcmask (!%p227_p10), 125952  }
  0x11   : > { %s1249_s9 = scalar_select %p157_p11, %s1116_s20, %s159_s8  }
  0x12   : > { %s1255_s11 = sshll.u32 (!%p227_p10), %s263_s10, 3  ;;  %899 = vmatprep.subr.bf16.mxu1 (!%p227_p10), %v1138_v0  ;;  %901 = vmatprep.mubr.msk.bf16.mxu1 (!%p227_p10), %vm1139_vm0, %v1138_v0  ;;  %p266_p13 = scmp.lt.s32.totalorder (!%p227_p10), %s1124_s22, 1 }
  0x13   : > { %s1141_s14 = smov (!%p227_p10), 112   ;;  %p835_p0 = scmp.ne.s32.totalorder (!%p227_p10), %s1120_s21, 7 }
  0x17   : > { %s1260_s12 = scalar_select %p272_p12, %s1120_s21, 7 }
  0x18   : > { %s1268_s17 = scalar_select %p266_p13, %s1124_s22, 1 }
  0x19   : > { %s856_s13 = sshll.u32 %s1260_s12, 6  ;;  %v1145_v46 = vmov (!%p835_p0), 0.0   ;;  %v1034_v47 = vld [vmem:[%s1373_s3] sm:$0xff] (!%p835_p0)   ;;  %s1146_s7 = smov (!%p835_p0), 64   ;;  %v1035_v49 = vld [vmem:[%s1373_s3 + $0x8] sm:$0xff] (!%p835_p0)   ;;  %v1036_v51 = vld [vmem:[%s1373_s3 + $0x10] sm:$0xff] (!%p835_p0)  }
  0x1a   : > { %s282_s16 = scalar_lea.vmem %s1372_s2, %s856_s13  ;;  %s819_s26 = sshll.u32 %s1268_s17, 2  ;;  %vm1149_vm5 = vmmov (!%p835_p0), 0   ;;  %v1037_v52 = vld [vmem:[%s1373_s3 + $0x18] sm:$0xff] (!%p835_p0)   ;;  %v1038_v53 = vld [vmem:[%s1373_s3 + $0x20] sm:$0xff] (!%p835_p0)   ;;  %v1039_v54 = vld [vmem:[%s1373_s3 + $0x28] sm:$0xff] (!%p835_p0)   ;;  %vm566_vm6 = vcmask (!%p835_p0), 261120  }
  0x1b   : > { %v1015_v1 = vld [vmem:[%s282_s16] sm:$0xff]   ;;  %v1016_v2 = vld [vmem:[%s282_s16 + $0x8] sm:$0xff]   ;;  %v1017_v3 = vld [vmem:[%s282_s16 + $0x10] sm:$0xff]   ;;  %s269_s8 = scalar_lea.vmem %s1370_s0, %s819_s26  ;;  %s1140_s13 = smov 96   ;;  %vm569_vm7 = vcmask (!%p835_p0), 392192   ;;  %vm572_vm8 = vcmask (!%p835_p0), 523264  }
  0x1c   : > { %880 = vmatpush3.bf16.msra.mxu0 %v1015_v1  ;;  %v1018_v4 = vld [vmem:[%s282_s16 + $0x18] sm:$0xff]   ;;  %v1019_v5 = vld [vmem:[%s282_s16 + $0x20] sm:$0xff]   ;;  %v1020_v6 = vld [vmem:[%s282_s16 + $0x28] sm:$0xff]   ;;  %s820_s15 = sshll.u32 %s1268_s17, 3  ;;  %vm575_vm9 = vcmask (!%p835_p0), 654336   ;;  %vm578_vm10 = vcmask (!%p835_p0), 785408  }
  0x1d   : > { %881 = vmatprep.subr.bf16.mxu0 %v1138_v0  ;;  %v1021_v7 = vld [vmem:[%s282_s16 + $0x30] sm:$0xff]   ;;  %v1022_v8 = vld [vmem:[%s282_s16 + $0x38] sm:$0xff]   ;;  %v284_v9 = vld [vmem:[%s269_s8] sm:$0xf]  ;;  %s275_s16 = sadd.s32 %s820_s15, %s1260_s12  ;;  %s834_s12 = sshll.u32 %s1120_s21, 2  ;;  %vm581_vm11 = vcmask (!%p835_p0), 916480  }
  0x1e   : > { %s821_s26 = sshll.u32 %s275_s16, 2  ;;  %s506_s17 = scalar_lea.vmem [#allocation2], %s834_s12  ;;  %v1040_v55 = vld [vmem:[%s1373_s3 + $0x30] sm:$0xff] (!%p835_p0)   ;;  %v1041_v56 = vld [vmem:[%s1373_s3 + $0x38] sm:$0xff] (!%p835_p0)  }
  0x1f   : > { %s277_s8 = scalar_lea.vmem %s1371_s1, %s821_s26  ;;  %s1143_s15 = smov (!%p835_p0), 48  }
  0x20   : > { %882 = vmatpush3.bf16.msra.mxu0 %v1016_v2  ;;  %v390_v19 = vld [vmem:[%s277_s8] sm:$0xf]  ;;  %s1144_s16 = smov (!%p835_p0), 32   ;;  %s1147_s12 = smov (!%p835_p0), 80  }
  0x21   : > { %883 = vmatprep.subr.bf16.mxu0 %v1138_v0  ;;  %v391_v20 = vunpack.c.l.bf16 %v390_v19 }
  0x24   : > { %884 = vmatpush3.bf16.msra.mxu0 %v1017_v3 }
  0x25   : > { %885 = vmatprep.subr.bf16.mxu0 %v1138_v0 }
  0x28   : > { %886 = vmatpush3.bf16.msra.mxu0 %v1018_v4 }
  0x29   : > { %887 = vmatprep.subr.bf16.mxu0 %v1138_v0 }
  0x2c   : > { %888 = vmatpush3.bf16.msra.mxu0 %v1019_v5 }
  0x2d   : > { %889 = vmatprep.subr.bf16.mxu0 %v1138_v0 }
  0x30   : > { %890 = vmatpush3.bf16.msra.mxu0 %v1020_v6 }
  0x31   : > { %891 = vmatprep.subr.bf16.mxu0 %v1138_v0 }
  0x34   : > { %892 = vmatpush3.bf16.msra.mxu0 %v1021_v7 }
  0x35   : > { %893 = vmatprep.subr.bf16.mxu0 %v1138_v0 }
  0x38   : > { %894 = vmatpush3.bf16.msra.mxu0 %v1022_v8  ;;  %v843_v8 = vld [vmem:[%s1374_s4] ss:$0 sm:$0xff] (!%p835_p0) }
  0x39   : > { %911 = vmatprep.subr.bf16.mxu0 (!%p835_p0), %v1145_v46 }
  0x3b   : > { %896 = vmatmul.mubr.bf16.vlgmr.msra.gmra.mrb[0].mxu0 %v284_v9 }
  0x3c   : > { %912 = vmatpush3.bf16.msra.mxu0 (!%p835_p0), %v1034_v47  ;;  %927 = vmatprep.mubr.msk.bf16.mxu0 (!%p835_p0), %vm1149_vm5, %v1145_v46 }
  0x3d   : > { %913 = vmatprep.subr.bf16.mxu0 (!%p835_p0), %v1145_v46 }
  0x40   : > { %914 = vmatpush3.bf16.msra.mxu0 (!%p835_p0), %v1035_v49 }
  0x41   : > { %915 = vmatprep.subr.bf16.mxu0 (!%p835_p0), %v1145_v46 }
  0x44   : > { %916 = vmatpush3.bf16.msra.mxu0 (!%p835_p0), %v1036_v51 }
  0x45   : > { %917 = vmatprep.subr.bf16.mxu0 (!%p835_p0), %v1145_v46 }
  0x48   : > { %918 = vmatpush3.bf16.msra.mxu0 (!%p835_p0), %v1037_v52 }
  0x49   : > { %919 = vmatprep.subr.bf16.mxu0 (!%p835_p0), %v1145_v46 }
  0x4c   : > { %920 = vmatpush3.bf16.msra.mxu0 (!%p835_p0), %v1038_v53 }
  0x4d   : > { %921 = vmatprep.subr.bf16.mxu0 (!%p835_p0), %v1145_v46 }
  0x50   : > { %922 = vmatpush3.bf16.msra.mxu0 (!%p835_p0), %v1039_v54 }
  0x51   : > { %923 = vmatprep.subr.bf16.mxu0 (!%p835_p0), %v1145_v46 }
  0x54   : > { %924 = vmatpush3.bf16.msra.mxu0 (!%p835_p0), %v1040_v55 }
  0x55   : > { %925 = vmatprep.subr.bf16.mxu0 (!%p835_p0), %v1145_v46 }
  0x58   : > { %926 = vmatpush3.bf16.msra.mxu0 (!%p835_p0), %v1041_v56 }
 0x10e   : > { %v383_v10 = vpop.f32.mrb[0].mxu0 }
 0x10f   : > { %v389_v11 = vpack.c.bf16 %v383_v10, %v383_v10  ;;  %v897_v12 = vpop.f32.mrb[1].mxu0 }
 0x110   : > { %v386_v13 = vpop.f32.mrb[2].mxu0 }
 0x111   : > { %453 = vrot.lane.b32.xlu1 %v389_v11, %s1140_s13  ;;  %393 = vrot.lane.b32.xlu0 %v389_v11, %s1141_s14  ;;  %v898_v14 = vpop.f32.mrb[3].mxu0  ;;  %s265_s13 = scalar_lea.vmem [#allocation3], %s1255_s11  ;;  %s1142_s14 = smov (!%p835_p0), 16  }
 0x183   : > { %v394_v15 = vpop.permute.xlu0 %393  ;;  %v454_v17 = vpop.permute.xlu1 %453 }
 0x184   : > { %v400_v16 = vsel %vm395_vm1, %v394_v15, 0  ;;  %v460_v18 = vsel %vm458_vm2, %v454_v17, 0 }
 0x185   : > { %900 = vmatpush3.bf16.xpose.msra.mxu1 %v400_v16 }
 0x186   : > { %905 = vmatprep.subr.bf16.mxu1 %v1138_v0 }
 0x18c   : > { %902 = vmatmul.mubr.msk.bf16.vlgmr.msra.gmra.mrb[0].mxu1 %vm395_vm1, %v389_v11 }
 0x18d   : > { %906 = vmatpush3.bf16.msra.mxu1 %v460_v18  ;;  %907 = vmatprep.mubr.msk.bf16.mxu1 %vm1139_vm0, %v1138_v0 }
 0x25f   : > { %v436_v21 = vpop.f32.mrb[0].mxu1 }
 0x260   : > { %v437_v22 = vadd.f32 %v436_v21, %v391_v20  ;;  %v903_v23 = vpop.f32.mrb[1].mxu1 }
 0x261   : > { %v439_v24 = vpop.f32.mrb[2].mxu1 }
 0x262   : > { %v904_v25 = vpop.f32.mrb[3].mxu1  ;;  %v443_v26 = vsel %vm442_vm3, %v437_v22, -inf }
 0x263   : > { %444 = vmax.xlane.f32.xlu0 %v443_v26 }
 0x2f0   : > { %v445_v27 = vpop.xlane.xlu0 %444 }
 0x2f1   : > { %v446_v28 = vsub.f32 %v437_v22, %v445_v27 }
 0x2f3   : > { %v447_v29 = vmul.f32 1.442695, %v446_v28 }
 0x2f5   : > { %1023 = vpow2.f32 %v447_v29 }
 0x2ff   : > { %v1024_v30 = vpop.eup %1023 }
 0x300   : > { %v449_v31 = vsel %vm442_vm3, %v1024_v30, 0.0  ;;  %v452_v32 = vpack.c.bf16 %v1024_v30, %v1024_v30 }
 0x301   : > { %450 = vadd.xlane.f32.xlu1 %v449_v31 }
 0x302   : > { %908 = vmatmul.mubr.msk.bf16.vlgmr.msra.gmra.mrb[4].mxu1 %vm442_vm3, %v452_v32 }
 0x38e   : > { %v451_v33 = vpop.xlane.xlu1 %450 }
 0x38f   : > { %1025 = vrcp.f32 %v451_v33 }
 0x399   : > { %v1026_v34 = vpop.eup %1025 }
 0x3d4   : > { %512 = sbr.rel (%p835_p0) target bundleno = 1337 (0x539), region = 44 }
 0x3d5   : > { %v496_v35 = vpop.f32.mrb[4].mxu1 }
 0x3d6   : > { %v503_v36 = vmul.f32 %v1026_v34, %v496_v35  ;;  %v909_v37 = vpop.f32.mrb[5].mxu1 }
 0x3d7   : > { %v499_v38 = vpop.f32.mrb[6].mxu1 }
 0x3d8   : > { %v504_v39 = vpack.c.bf16 %v503_v36, %v503_v36  ;;  %v910_v40 = vpop.f32.mrb[7].mxu1 }
 0x3da   : > { %508 = vst.msk [vmem:[%s506_s17] sm:$0xf] %vm507_vm4, %v504_v39  ;;  %s1148_s17 = smov (!%p835_p0), 96  }
 0x3e1   : > { %v1027_v41 = vld [vmem:[#allocation2 + $0x4] ss:$0 sps:$4 sm:$0xff]   ;;  %v1028_v42 = vld [vmem:[#allocation2 + $0xc] ss:$0 sps:$4 sm:$0xff]   ;;  %v1029_v43 = vld [vmem:[#allocation2 + $0x8] ss:$0 sps:$4 sm:$0xff]  }
 0x3e2   : > { %531 = vrot.lane.b32.xlu0 %v1027_v41, %s1142_s14  ;;  %541 = vrot.lane.b32.xlu1 %v1028_v42, %s1143_s15  ;;  %v1030_v44 = vld [vmem:[#allocation2 + $0x10] ss:$0 sps:$4 sm:$0xff]   ;;  %v1031_v45 = vld [vmem:[#allocation2 + $0x14] ss:$0 sps:$4 sm:$0xff]   ;;  %v1032_v48 = vld [vmem:[#allocation2 + $0x18] ss:$0 sps:$4 sm:$0xff]  }
 0x3e3   : > { %v1033_v50 = vld [vmem:[#allocation2 + $0x1c] ss:$0 sps:$4 sm:$0xff]   ;;  %v513_v58 = vld [vmem:[#allocation2] sm:$0xf] }
 0x3e6   : > { %536 = vrot.lane.b32.xlu0 %v1029_v43, %s1144_s16  ;;  %546 = vrot.lane.b32.xlu1 %v1030_v44, %s1146_s7  ;;  %s1150_s16 = smov 112  }
 0x3ea   : > { %551 = vrot.lane.b32.xlu0 %v1031_v45, %s1147_s12  ;;  %556 = vrot.lane.b32.xlu1 %v1032_v48, %s1148_s17 }
 0x3ee   : > { %561 = vrot.lane.b32.xlu0 %v1033_v50, %s1150_s16 }
 0x454   : > { %v532_v57 = vpop.permute.xlu0 %531  ;;  %v542_v59 = vpop.permute.xlu1 %541 }
 0x455   : > { %v565_v60 = vsel %vm395_vm1, %v513_v58, %v532_v57 }
 0x458   : > { %v537_v61 = vpop.permute.xlu0 %536  ;;  %v547_v63 = vpop.permute.xlu1 %546 }
 0x459   : > { %v568_v62 = vsel %vm566_vm6, %v565_v60, %v537_v61 }
 0x45a   : > { %v571_v0 = vsel %vm569_vm7, %v568_v62, %v542_v59 }
 0x45b   : > { %v574_v1 = vsel %vm572_vm8, %v571_v0, %v547_v63 }
 0x45c   : > { %v552_v2 = vpop.permute.xlu0 %551  ;;  %v557_v4 = vpop.permute.xlu1 %556 }
 0x45d   : > { %v577_v3 = vsel %vm575_vm9, %v574_v1, %v552_v2 }
 0x45e   : > { %v580_v5 = vsel %vm578_vm10, %v577_v3, %v557_v4 }
 0x460   : > { %v562_v6 = vpop.permute.xlu0 %561 }
 0x461   : > { %v583_v7 = vsel %vm581_vm11, %v580_v5, %v562_v6 }
 0x462   : > { %928 = vmatmul.mubr.bf16.vlgmr.msra.gmra.mrb[0].mxu0 %v583_v7 }
 0x535   : > { %v690_v9 = vpop.f32.mrb[0].mxu0 }
 0x536   : > { %v691_v10 = vadd.f32 %v843_v8, %v690_v9  ;;  %v929_v11 = vpop.f32.mrb[1].mxu0 }
 0x537   : > { %v693_v12 = vpop.f32.mrb[2].mxu0 }
 0x538   : > { %696 = vst [vmem:[%s265_s13] sm:$0xff] %v691_v10  ;;  %v930_v13 = vpop.f32.mrb[3].mxu0 }
 0x539 PF: > { %s853_s7 = sshll.u32 %s1124_s22, 7  ;;  %s711_s17 = sshll.u32 %s265_s13, 4  ;;  %s712_s17 = int_to_ptr.vmem [resolvable:$true] %s711_s17 }
 0x53a   : > { %s1319_s12 = scalar_lea.hbm %s1375_s5, %s853_s7  ;;  %s698_s14 = scalar_lea.sflag [#allocation4], %s263_s10 }
 0x53b   : > { %s1042_s15 = scalar_lea.vmem %s712_s17, 128  ;;  %s1151_s16 = smov [#allocation3]  }
 0x53c   : > { %p1043_p1 = scmp.ne.s32.totalorder %s712_s17, %s1042_s15  ;;  %s1046_s26 = sshll.u32 %s1151_s16, 4  ;;  %s1047_s26 = int_to_ptr.vmem [resolvable:$false] %s1046_s26 }
 0x53d   : > { %s1048_s27 = scalar_lea.vmem %s1047_s26, 256  ;;  %p1049_p5 = scmp.lt.s32.totalorder %s712_s17, %s1047_s26 }
 0x53e   : > { %p1044_p2 = pnand %p1043_p1, %p1231_p3  ;;  %p1050_p6 = scmp.lt.s32.totalorder %s1048_s27, %s1042_s15 }
 0x540   : > { %p1045_p4 = pneg %p1044_p2  ;;  %p1051_p7 = por %p1050_p6, %p1049_p5 }
 0x542   : > { %p1052_p8 = pnand %p1051_p7, %p1045_p4 }
 0x544   : > { %1055 = shalt.err (!%p1052_p8)
}
 0x545   : > { %s1056_s22 = scalar_lea.hbm %s1319_s12, 128  ;;  %s1060_s13 = scalar_lea.hbm %s1375_s5, 256 }
 0x546   : > { %p1057_p10 = scmp.ne.s32.totalorder %s1319_s12, %s1056_s22  ;;  %p1061_p13 = scmp.lt.u32.totalorder %s1319_s12, %s1375_s5 }
 0x547   : > { %p1062_p0 = scmp.lt.u32.totalorder %s1060_s13, %s1056_s22  ;;  %p1064_p2 = scmp.lt.u32.totalorder %s1056_s22, %s1319_s12 }
 0x548   : > { %p1058_p11 = pnand %p1057_p10, %p1231_p3 }
 0x549   : > { %p1063_p1 = por %p1062_p0, %p1061_p13 }
 0x54a   : > { %p1059_p12 = pneg %p1058_p11 }
 0x54b   : > { %p1065_p4 = por %p1064_p2, %p1063_p1 }
 0x54d   : > { %p1066_p5 = pnand %p1065_p4, %p1059_p12 }
 0x54f   : > { %1069 = shalt.err (!%p1066_p5)
}
 0x550   : > { %931 = dma.vmem_to_hbm [thread:$0]  (%p1231_p3), %s712_s17, 128, %s1319_s12, %s698_s14  }
 0x551 PF: > { %p937_p6 = scmp.ge.s32.totalorder %s1136_s25, 2  ;;  %s723_s8 = sand.u32 1, %s1108_s18  }
 0x552   : > { %s724_s15 = scalar_lea.sflag [#allocation4], %s723_s8 }
 0x553   : > { %p934_p7 = pnand %p937_p6, %p1241_p9 }
 0x555   : > { %1103 = dma.done.wait (!%p934_p7), %s724_s15, 128  }
 0x556   : > { %1105 = vsyncadd (!%p934_p7), %s724_s15, 4294967168  ;;  %s18_s25 = sadd.s32 1, %s1136_s25   ;;  %s1378_s18 = smov %s1112_s19 }
 0x557   : > { %p15_p8 = scmp.ge.s32.totalorder %s18_s25, 18   ;;  %s1379_s19 = smov %s1116_s20 }
 0x558   : > { %s1380_s20 = smov %s1249_s9  ;;  %s1381_s21 = smov %s1128_s23 }
 0x559   : > { %s1382_s22 = smov %s1132_s24  ;;  %s1383_s23 = smov %s1386_s28 }
 0x55a   : > { %s1384_s24 = smov %s1390_s29  ;;  %17 = sbr.rel (!%p15_p8) target bundleno = 5 (0x5), region = 93 }
 0x561   :  { %729 = vsyncpa [#allocation4], 1 }
 0x562   :  { %731 = vsyncpa [#allocation4 + $0x1], 1 }

</bundles_post_ra>
